<compile_context>
chip_gen: v5e
topology: v5e:2x2
jax: 0.10.0
libtpu: 0.0.40
codegen_flags: <defaults>
</compile_context>

<pallas_src>
import jax
import jax.numpy as jnp
from jax.experimental import pallas as pl
from jax.experimental.pallas import tpu as pltpu


def _round_up(x: int, m: int) -> int:
    return (x + m - 1) // m * m


# ---------------------------------------------------------------------------
# Stage 1: xw = x @ W   (cheap, row-tiled, f32 on the MXU)
# ---------------------------------------------------------------------------
def _xw_kernel(x_ref, w_ref, o_ref):
    o_ref[...] = jnp.dot(x_ref[...], w_ref[...],
                         preferred_element_type=jnp.float32)


def _apply_linear(x, w, *, tm):
    n, d_in = x.shape
    d_out = w.shape[1]
    return pl.pallas_call(
        _xw_kernel,
        out_shape=jax.ShapeDtypeStruct((n, d_out), jnp.float32),
        grid_spec=pltpu.PrefetchScalarGridSpec(
            num_scalar_prefetch=0,
            grid=(n // tm,),
            in_specs=[
                pl.BlockSpec((tm, d_in), lambda i: (i, 0)),
                pl.BlockSpec((d_in, d_out), lambda i: (0, 0)),
            ],
            out_specs=pl.BlockSpec((tm, d_out), lambda i: (i, 0)),
        ),
        compiler_params=pltpu.CompilerParams(
            dimension_semantics=("parallel",)),
        cost_estimate=pl.CostEstimate(
            flops=2 * n * d_in * d_out,
            transcendentals=0,
            bytes_accessed=4 * (n * d_in + d_in * d_out + n * d_out)),
    )(x, w)


# ---------------------------------------------------------------------------
# Stage 2: out = (1+eps)*xw + adj @ xw + b   (tiled neighbor-sum reduction)
# ---------------------------------------------------------------------------
def _gin_agg_kernel(eps_ref, adj_ref, xw_k_ref, xw_self_ref, b_ref,
                    o_ref, acc_ref):
    k = pl.program_id(1)

    @pl.when(k == 0)
    def _init():
        # Fold the self term and bias into the accumulator init (f32, exact).
        one_plus_eps = 1.0 + eps_ref[0]
        acc_ref[...] = one_plus_eps * xw_self_ref[...] + b_ref[...]

    # Neighbor aggregation: adj tile (bf16, exact 0/1) x xw K-tile (bf16 feed),
    # accumulated in f32 on the MXU.
    acc_ref[...] += jnp.dot(
        adj_ref[...],
        xw_k_ref[...].astype(jnp.bfloat16),
        preferred_element_type=jnp.float32,
    )

    @pl.when(k == pl.num_programs(1) - 1)
    def _finalize():
        o_ref[...] = acc_ref[...].astype(o_ref.dtype)


def gin_conv(adj, x, w, b, eps, *, tm=512, tk=1024):
    """GIN forward.

    adj: (N, N) adjacency, adj[dst, src] = 1.0 for edge src -> dst
    x:   (N, D_in) node features (f32)
    w:   (D_in, D_out) weight, already transposed vs. torch Linear.weight
    b:   (1, D_out) bias
    eps: (1,) epsilon scalar
    Returns (N, D_out) f32.
    """
    N, D_in = x.shape
    D_out = w.shape[1]

    # Lane-dense padding of feature dims (last dim multiple of 128).
    d_in_p = _round_up(D_in, 128)
    d_out_p = _round_up(D_out, 128)

    # Tile sizes: tk is the neighbor-reduction (lane) tile, multiple of 128;
    # tm is the row (sublane) tile, tm | tk so a single padded N serves both.
    tk = min(tk, max(128, pl.next_power_of_2(N)))
    tm = min(tm, tk)
    n_p = _round_up(N, tk)

    # Zero padding: padded src columns/rows contribute nothing and padded dst
    # rows are sliced off at the end.
    adj_p = jnp.pad(adj.astype(jnp.bfloat16),
                    ((0, n_p - N), (0, n_p - N)))
    x_p = jnp.pad(x.astype(jnp.float32),
                  ((0, n_p - N), (0, d_in_p - D_in)))
    w_p = jnp.pad(w.astype(jnp.float32),
                  ((0, d_in_p - D_in), (0, d_out_p - D_out)))
    b_p = jnp.pad(b.astype(jnp.float32),
                  ((0, 0), (0, d_out_p - D_out)))

    # Stage 1: reassociate ((1+eps)x + adj@x) @ W  ->  (1+eps)(x@W) + adj@(x@W)
    xw = _apply_linear(x_p, w_p, tm=tm)

    # Stage 2: tiled neighbor sum + GIN combine.
    grid = (n_p // tm, n_p // tk)
    flops = 2 * n_p * n_p * d_out_p + 3 * n_p * d_out_p
    bytes_accessed = (n_p * n_p * 2                          # adj (bf16)
                      + (grid[0] + 1) * n_p * d_out_p * 4    # xw streams
                      + n_p * d_out_p * 4)                   # output

    out_p = pl.pallas_call(
        _gin_agg_kernel,
        out_shape=jax.ShapeDtypeStruct((n_p, d_out_p), jnp.float32),
        grid_spec=pltpu.PrefetchScalarGridSpec(
            num_scalar_prefetch=0,
            grid=grid,
            in_specs=[
                pl.BlockSpec(memory_space=pltpu.SMEM),               # eps
                pl.BlockSpec((tm, tk), lambda i, k: (i, k)),         # adj tile
                pl.BlockSpec((tk, d_out_p), lambda i, k: (k, 0)),    # xw K-tile
                pl.BlockSpec((tm, d_out_p), lambda i, k: (i, 0)),    # xw self
                pl.BlockSpec((1, d_out_p), lambda i, k: (0, 0)),     # bias
            ],
            out_specs=pl.BlockSpec((tm, d_out_p), lambda i, k: (i, 0)),
            scratch_shapes=[pltpu.VMEM((tm, d_out_p), jnp.float32)],
        ),
        compiler_params=pltpu.CompilerParams(
            dimension_semantics=("parallel", "arbitrary")),
        cost_estimate=pl.CostEstimate(
            flops=int(flops), transcendentals=0,
            bytes_accessed=int(bytes_accessed)),
    )(eps, adj_p, xw, xw, b_p)

    return out_p[:N, :D_out]


if __name__ == "__main__":
    key = jax.random.PRNGKey(0)
    k_feat, k_adj, k_w, k_b = jax.random.split(key, 4)

    # Small but non-trivial: exercises feature-dim padding, node-dim padding,
    # multiple row tiles and multiple neighbor-reduction (K) tiles.
    N, D_in, D_out = 200, 32, 48
    init_eps = 0.1

    x = jax.random.normal(k_feat, (N, D_in), dtype=jnp.float32)
    adj = jax.random.bernoulli(k_adj, p=0.2, shape=(N, N)).astype(jnp.float32)

    # nn.Linear(D_in, D_out) init: uniform(-1/sqrt(D_in), 1/sqrt(D_in)).
    bound = 1.0 / (D_in ** 0.5)
    w = jax.random.uniform(k_w, (D_in, D_out), minval=-bound, maxval=bound,
                           dtype=jnp.float32)   # stored as (in, out) == weight.T
    b = jax.random.uniform(k_b, (1, D_out), minval=-bound, maxval=bound,
                           dtype=jnp.float32)
    eps = jnp.array([init_eps], dtype=jnp.float32)

    # Use small tiles here so the grid/accumulator path (multiple K steps and
    # row tiles) is actually exercised at this toy size.
    out = gin_conv(adj, x, w, b, eps, tm=64, tk=128)
    out = jax.block_until_ready(out)

    # Pure-JAX f32 reference (the kernel uses a bf16 MXU feed for adj @ xw,
    # so allow a loose-ish tolerance; adj in bf16 is exact).
    ref = ((1.0 + init_eps) * x + adj @ x) @ w + b
    assert out.shape == (N, D_out)
    assert jnp.allclose(out, ref, atol=2e-2, rtol=2e-2), "mismatch vs reference"

    print("KERNEL_OK")
</pallas_src>

<mosaic_0001>
module attributes {stable_mosaic.version = 11 : i64} {
  func.func @_xw_kernel(%arg0: i32, %arg1: memref<64x128xf32, #tpu.memory_space<vmem>>, %arg2: memref<128x128xf32, #tpu.memory_space<vmem>>, %arg3: memref<64x128xf32, #tpu.memory_space<vmem>>) attributes {dimension_semantics = [#tpu.dimension_semantics<parallel>], iteration_bounds = array<i64: 4>, scalar_prefetch = 0 : i64, scratch_operands = 0 : i64, tpu.core_type = #tpu.core_type<tc>, window_params = [{transform_indices = @transform_0, window_bounds = array<i64: 64, 128>}, {pipeline_mode = #tpu.pipeline_mode<synchronous>, transform_indices = @transform_1, window_bounds = array<i64: 128, 128>}, {transform_indices = @transform_2, window_bounds = array<i64: 64, 128>}]} {
    %c0 = arith.constant 0 : index
    %c0_0 = arith.constant 0 : index
    %0 = vector.load %arg1[%c0, %c0_0] : memref<64x128xf32, #tpu.memory_space<vmem>>, vector<64x128xf32>
    %c0_1 = arith.constant 0 : index
    %c0_2 = arith.constant 0 : index
    %1 = vector.load %arg2[%c0_1, %c0_2] : memref<128x128xf32, #tpu.memory_space<vmem>>, vector<128x128xf32>
    %cst = arith.constant dense<0.000000e+00> : vector<64x128xf32>
    %2 = tpu.matmul %0, %1, %cst {dimension_numbers = #tpu.dot_dimension_numbers<[1], [0], [0], [1], [0, 0, 1, 1], [], []>} : vector<64x128xf32>, vector<128x128xf32>, vector<64x128xf32> -> vector<64x128xf32>
    %c0_3 = arith.constant 0 : index
    %c0_4 = arith.constant 0 : index
    %3 = vector.load %arg3[%c0_3, %c0_4] : memref<64x128xf32, #tpu.memory_space<vmem>>, vector<64x128xf32>
    tpu.vector_store %arg3[%c0_3, %c0_4], %2 {strides = array<i32>} : memref<64x128xf32, #tpu.memory_space<vmem>>, vector<64x128xf32>,
    return
  }
  func.func @transform_0(%arg0: i32) -> (i32, i32) {
    %c0_i32 = arith.constant 0 : i32
    %c0_i32_0 = arith.constant 0 : i32
    return %arg0, %c0_i32 : i32, i32
  }
  func.func @transform_1(%arg0: i32) -> (i32, i32) {
    %c0_i32 = arith.constant 0 : i32
    %c0_i32_0 = arith.constant 0 : i32
    %c0_i32_1 = arith.constant 0 : i32
    return %c0_i32, %c0_i32_0 : i32, i32
  }
  func.func @transform_2(%arg0: i32) -> (i32, i32) {
    %c0_i32 = arith.constant 0 : i32
    %c0_i32_0 = arith.constant 0 : i32
    return %arg0, %c0_i32 : i32, i32
  }
}

</mosaic_0001>

<bundles_post_ra>
// kernel: tpu_custom_call.1
= control target key start
LH: loop header
LB: loop body
LE: loop exit
PB: predicated region body
PF: predicated region fallthrough
CT: control target
= control target key end

     0   :  { %7 = vsyncpa [#allocation3], 0  ;;  %s790_s0 = inlined_call_operand.hbm [shape: f32[256,128], index: 0, kind: input, shape index: {}]   ;;  %s791_s1 = inlined_call_operand.hbm [shape: f32[128,128], index: 1, kind: input, shape index: {}]   ;;  %s792_s2 = inlined_call_operand.hbm [shape: f32[256,128], index: 2, kind: output, shape index: {}]  }
   0x1   :  { %9 = vsyncpa [#allocation3 + $0x1], 0 }
   0x2   :  { %10 = vsyncpa [#allocation6], 0 }
   0x3   :  { %11 = vsyncpa [#allocation4], 0 }
   0x4   :  { %13 = vsyncpa [#allocation4 + $0x1], 0  ;;  %s634_s9 = smov 0   ;;  %s636_s10 = smov 0  }
   0x5   :  { %s638_s11 = smov 0   ;;  %s640_s12 = smov 0  }
   0x6 LB: > { %s655_s13 = sadd.s32 4294967295, %s612_s12   ;;  %s355_s14 = sadd.s32 4294967294, %s612_s12   ;;  %s612_s12 = sphi %s640_s12, %s801_s12   ;;  %s608_s11 = sphi %s638_s11, %s800_s11   ;;  %s604_s10 = sphi %s636_s10, %s799_s10   ;;  %s600_s9 = sphi %s634_s9, %s798_s9  }
   0x7   : > { %p39_p0 = scmp.ne.s32.totalorder %s604_s10, %s600_s9  ;;  %p40_p1 = scmp.eq.s32.totalorder %s655_s13, 0 }
   0x8   : > { %p84_p2 = scmp.eq.s32.totalorder %s655_s13, 3  ;;  %p90_p3 = scmp.eq.s32.totalorder %s355_s14, 3 }
   0x9   : > { %p664_p4 = por %p40_p1, %p39_p0  ;;  %p356_p5 = scmp.ge.s32.totalorder %s612_s12, 1 }
   0xa   : > { %p669_p6 = por %p90_p3, %p39_p0  ;;  %p97_p7 = scmp.lt.s32.totalorder %s612_s12, 5 }
   0xb   : > { %s108_s19 = sshll.u32 %s791_s1, 4  ;;  %s614_s21 = smov [#allocation5]   ;;  %s109_s19 = int_to_ptr.hbm [resolvable:$true] %s108_s19 }
   0xc   : > { %p677_p8 = pnand %p356_p5, %p97_p7  ;;  %s110_s22 = sshll.u32 %s614_s21, 4  ;;  %s111_s22 = int_to_ptr.vmem [resolvable:$true] %s110_s22 }
   0xd   : > { %s686_s23 = sadd.s32 1, %s612_s12   ;;  %s615_s24 = smov 128  }
   0xe   : > { %p429_p9 = pneg %p677_p8  ;;  %s616_s25 = smov 8  }
   0xf   : > { %s23_s26 = ssub.s32 %s612_s12, %s686_s23  ;;  %s26_s27 = sadd.s32 1, %s608_s11 }
  0x10   : > { %p430_p10 = pnand %p429_p9, %p40_p1  ;;  %p24_p11 = scmp.eq.s32.totalorder %s23_s26, 0 }
  0x11   : > { %p33_p12 = scmp.ne.s32.totalorder %s608_s11, %s604_s10  ;;  %p34_p13 = scmp.eq.s32.totalorder %s612_s12, 0 }
  0x12   : > { %432 = dma.hbm_to_vmem [thread:$0]  (!%p430_p10), %s109_s19, 2048, %s111_s22, [#allocation6], %s615_s24, %s615_s24, %s616_s25  }
  0x13   : > { %s698_s28 = scalar_select %p24_p11, %s608_s11, %s26_s27  }
  0x14   : > { %p702_p0 = por %p84_p2, %p33_p12  ;;  %p442_p3 = scmp.lt.s32.totalorder %s612_s12, 4 }
  0x15   : > { %s124_s30 = sand.u32 1, %s608_s11   ;;  %s371_s3 = sshll.u32 %s612_s12, 6 }
  0x16   : > { %p35_p5 = por %p34_p13, %p33_p12  ;;  %s359_s4 = sshll.u32 %s124_s30, 6 }
  0x17   : > { %s133_s7 = scalar_lea.hbm %s790_s0, %s371_s3  ;;  %s128_s14 = scalar_lea.vmem [#allocation2], %s359_s4 }
  0x18   : > { %s134_s8 = sshll.u32 %s133_s7, 4  ;;  %s136_s17 = sshll.u32 %s128_s14, 4  ;;  %s135_s8 = int_to_ptr.hbm [resolvable:$true] %s134_s8  ;;  %s137_s17 = int_to_ptr.vmem [resolvable:$true] %s136_s17 }
  0x19   : > { %p712_p7 = pnand %p442_p3, %p35_p5  ;;  %s125_s19 = scalar_lea.sflag [#allocation3], %s124_s30 }
  0x1a   : > { %s512_s21 = sshra.s32 %s135_s8, 4  ;;  %s519_s3 = scalar_lea.hbm %s790_s0, 256  ;;  %s513_s21 = int_to_ptr.hbm [resolvable:$true] %s512_s21 }
  0x1b   : > { %s514_s22 = scalar_lea.hbm %s513_s21, 64  ;;  %p516_p9 = pneg %p712_p7 }
  0x1c   : > { %p515_p2 = scmp.ne.s32.totalorder %s513_s21, %s514_s22  ;;  %p520_p12 = scmp.lt.s32.totalorder %s513_s21, %s790_s0 }
  0x1d   : > { %p521_p13 = scmp.lt.s32.totalorder %s519_s3, %s514_s22 }
  0x1e   : > { %p517_p10 = pnand %p516_p9, %p515_p2 }
  0x1f   : > { %p522_p3 = por %p521_p13, %p520_p12 }
  0x20   : > { %p518_p11 = pneg %p517_p10 }
  0x22   : > { %p523_p5 = pnand %p522_p3, %p518_p11 }
  0x24   : > { %526 = shalt.err (!%p523_p5)
}
  0x25   : > { %436 = dma.hbm_to_vmem [thread:$0]  (!%p712_p7), %s135_s8, 1024, %s137_s17, %s125_s19, %s615_s24, %s615_s24, %s616_s25  }
  0x26   : > { %148 = sbr.rel (%p677_p8) target bundleno = 223 (0xdf), region = 28  ;;  %s732_s30 = sand.u32 (!%p677_p8), 1, %s604_s10  }
  0x27   : > { %s363_s6 = sshll.u32 (!%p677_p8), %s732_s30, 6  ;;  %s151_s7 = scalar_lea.sflag (!%p677_p8), [#allocation3], %s732_s30 }
  0x28   : > { %s738_s14 = scalar_lea.vmem (!%p677_p8), [#allocation2], %s363_s6 }
  0x2b   : > { %587 = dma.done.wait (%p664_p4), %s151_s7, 1024  }
  0x2c   : > { %589 = vsyncadd (%p664_p4), %s151_s7, 4294966272 }
  0x2d   : > { %591 = dma.done.wait (%p40_p1), [#allocation6], 2048  }
  0x2e   : > { %593 = vsyncadd (%p40_p1), [#allocation6], 4294965248  ;;  %v206_v0 = vld [vmem:[#allocation5 + $0x78] sm:$0xff]  ;;  %v205_v1 = vld [vmem:[#allocation5 + $0x70] sm:$0xff]  ;;  %s180_s15 = scalar_lea.vmem [#allocation7], %s363_s6  ;;  %s372_s20 = sshll.u32 %s655_s13, 6 }
  0x2f   : > { %374 = vmatpush.msra.mxu2 %v206_v0  ;;  %375 = vmatpush.msra.mxu3 %v206_v0  ;;  %v204_v2 = vld [vmem:[#allocation5 + $0x68] sm:$0xff]  ;;  %v203_v3 = vld [vmem:[#allocation5 + $0x60] sm:$0xff]  ;;  %v202_v4 = vld [vmem:[#allocation5 + $0x58] sm:$0xff]  ;;  %s268_s8 = scalar_lea.hbm %s792_s2, %s372_s20  ;;  %s269_s17 = sshll.u32 %s180_s15, 4  ;;  %s270_s17 = int_to_ptr.vmem [resolvable:$true] %s269_s17 }
  0x30   : > { %207 = vmatpush.msra.mxu0 %v206_v0  ;;  %373 = vmatpush.msra.mxu1 %v206_v0  ;;  %v201_v5 = vld [vmem:[#allocation5 + $0x50] sm:$0xff]  ;;  %v200_v6 = vld [vmem:[#allocation5 + $0x48] sm:$0xff]  ;;  %v199_v7 = vld [vmem:[#allocation5 + $0x40] sm:$0xff]  ;;  %s271_s18 = sshll.u32 %s268_s8, 4  ;;  %s257_s13 = scalar_lea.sflag [#allocation4], %s732_s30  ;;  %s272_s18 = int_to_ptr.hbm [resolvable:$true] %s271_s18 }
  0x31   : > { %377 = vmatpush.msra.mxu2 %v205_v1  ;;  %378 = vmatpush.msra.mxu3 %v205_v1  ;;  %v198_v8 = vld [vmem:[#allocation5 + $0x38] sm:$0xff]  ;;  %v197_v9 = vld [vmem:[#allocation5 + $0x30] sm:$0xff]  ;;  %v196_v10 = vld [vmem:[#allocation5 + $0x28] sm:$0xff]  ;;  %s556_s19 = sshra.s32 %s272_s18, 4  ;;  %s562_s27 = scalar_lea.hbm %s792_s2, 256  ;;  %s557_s19 = int_to_ptr.hbm [resolvable:$true] %s556_s19 }
  0x32   : > { %208 = vmatpush.msra.mxu0 %v205_v1  ;;  %376 = vmatpush.msra.mxu1 %v205_v1  ;;  %v195_v11 = vld [vmem:[#allocation5 + $0x20] sm:$0xff]  ;;  %v194_v12 = vld [vmem:[#allocation5 + $0x18] sm:$0xff]  ;;  %v193_v13 = vld [vmem:[#allocation5 + $0x10] sm:$0xff]  ;;  %s558_s21 = scalar_lea.hbm %s557_s19, 64  ;;  %p563_p7 = scmp.lt.s32.totalorder %s557_s19, %s792_s2 }
  0x33   : > { %380 = vmatpush.msra.mxu2 %v204_v2  ;;  %381 = vmatpush.msra.mxu3 %v204_v2  ;;  %v192_v14 = vld [vmem:[#allocation5 + $0x8] sm:$0xff]  ;;  %v191_v15 = vld [vmem:[#allocation5] sm:$0xff]  ;;  %v189_v17 = vld [vmem:[%s738_s14 + $0x30] sm:$0xff]  ;;  %p559_p1 = scmp.ne.s32.totalorder %s557_s19, %s558_s21  ;;  %p564_p2 = scmp.lt.s32.totalorder %s562_s27, %s558_s21 }
  0x34   : > { %209 = vmatpush.msra.mxu0 %v204_v2  ;;  %379 = vmatpush.msra.mxu1 %v204_v2  ;;  %v187_v16 = vld [vmem:[%s738_s14 + $0x20] sm:$0xff]  ;;  %v185_v19 = vld [vmem:[%s738_s14 + $0x10] sm:$0xff]  ;;  %v188_v20 = vld [vmem:[%s738_s14 + $0x28] sm:$0xff] }
  0x35   : > { %383 = vmatpush.msra.mxu2 %v203_v3  ;;  %384 = vmatpush.msra.mxu3 %v203_v3  ;;  %v183_v18 = vld [vmem:[%s738_s14] sm:$0xff]  ;;  %v190_v21 = vld [vmem:[%s738_s14 + $0x38] sm:$0xff]  ;;  %v184_v22 = vld [vmem:[%s738_s14 + $0x8] sm:$0xff]  ;;  %p560_p4 = pnand %p559_p1, %p702_p0  ;;  %p565_p9 = por %p564_p2, %p563_p7 }
  0x36   : > { %210 = vmatpush.msra.mxu0 %v203_v3  ;;  %382 = vmatpush.msra.mxu1 %v203_v3  ;;  %v186_v23 = vld [vmem:[%s738_s14 + $0x18] sm:$0xff] }
  0x37   : > { %386 = vmatpush.msra.mxu2 %v202_v4  ;;  %387 = vmatpush.msra.mxu3 %v202_v4  ;;  %p561_p8 = pneg %p560_p4 }
  0x38   : > { %211 = vmatpush.msra.mxu0 %v202_v4  ;;  %385 = vmatpush.msra.mxu1 %v202_v4 }
  0x39   : > { %389 = vmatpush.msra.mxu2 %v201_v5  ;;  %390 = vmatpush.msra.mxu3 %v201_v5  ;;  %p566_p10 = pnand %p565_p9, %p561_p8 }
  0x3a   : > { %212 = vmatpush.msra.mxu0 %v201_v5  ;;  %388 = vmatpush.msra.mxu1 %v201_v5 }
  0x3b   : > { %392 = vmatpush.msra.mxu2 %v200_v6  ;;  %393 = vmatpush.msra.mxu3 %v200_v6 }
  0x3c   : > { %213 = vmatpush.msra.mxu0 %v200_v6  ;;  %391 = vmatpush.msra.mxu1 %v200_v6 }
  0x3d   : > { %395 = vmatpush.msra.mxu2 %v199_v7  ;;  %396 = vmatpush.msra.mxu3 %v199_v7 }
  0x3e   : > { %214 = vmatpush.msra.mxu0 %v199_v7  ;;  %394 = vmatpush.msra.mxu1 %v199_v7 }
  0x3f   : > { %398 = vmatpush.msra.mxu2 %v198_v8  ;;  %399 = vmatpush.msra.mxu3 %v198_v8 }
  0x40   : > { %215 = vmatpush.msra.mxu0 %v198_v8  ;;  %397 = vmatpush.msra.mxu1 %v198_v8 }
  0x41   : > { %401 = vmatpush.msra.mxu2 %v197_v9  ;;  %402 = vmatpush.msra.mxu3 %v197_v9 }
  0x42   : > { %216 = vmatpush.msra.mxu0 %v197_v9  ;;  %400 = vmatpush.msra.mxu1 %v197_v9 }
  0x43   : > { %404 = vmatpush.msra.mxu2 %v196_v10  ;;  %405 = vmatpush.msra.mxu3 %v196_v10 }
  0x44   : > { %217 = vmatpush.msra.mxu0 %v196_v10  ;;  %403 = vmatpush.msra.mxu1 %v196_v10 }
  0x45   : > { %407 = vmatpush.msra.mxu2 %v195_v11  ;;  %408 = vmatpush.msra.mxu3 %v195_v11 }
  0x46   : > { %218 = vmatpush.msra.mxu0 %v195_v11  ;;  %406 = vmatpush.msra.mxu1 %v195_v11 }
  0x47   : > { %410 = vmatpush.msra.mxu2 %v194_v12  ;;  %411 = vmatpush.msra.mxu3 %v194_v12 }
  0x48   : > { %219 = vmatpush.msra.mxu0 %v194_v12  ;;  %409 = vmatpush.msra.mxu1 %v194_v12 }
  0x49   : > { %413 = vmatpush.msra.mxu2 %v193_v13  ;;  %414 = vmatpush.msra.mxu3 %v193_v13 }
  0x4a   : > { %220 = vmatpush.msra.mxu0 %v193_v13  ;;  %412 = vmatpush.msra.mxu1 %v193_v13 }
  0x4b   : > { %416 = vmatpush.msra.mxu2 %v192_v14  ;;  %417 = vmatpush.msra.mxu3 %v192_v14 }
  0x4c   : > { %221 = vmatpush.msra.mxu0 %v192_v14  ;;  %415 = vmatpush.msra.mxu1 %v192_v14 }
  0x4d   : > { %419 = vmatpush.msra.mxu2 %v191_v15  ;;  %420 = vmatpush.msra.mxu3 %v191_v15 }
  0x4e   : > { %235 = vmatmul.f32.vlgmr.msra.gmra.mxu2 %v187_v16  ;;  %241 = vmatmul.f32.vlgmr.msra.gmra.mxu3 %v189_v17 }
  0x4f   : > { %222 = vmatpush.msra.mxu0 %v191_v15  ;;  %418 = vmatpush.msra.mxu1 %v191_v15 }
  0x50   : > { %223 = vmatmul.f32.vlgmr.msra.gmra.mxu0 %v183_v18  ;;  %229 = vmatmul.f32.vlgmr.msra.gmra.mxu1 %v185_v19 }
  0x56   : > { %238 = vmatmul.f32.gmra.mxu2 %v188_v20  ;;  %244 = vmatmul.f32.gmra.mxu3 %v190_v21 }
  0x58   : > { %226 = vmatmul.f32.gmra.mxu0 %v184_v22  ;;  %232 = vmatmul.f32.gmra.mxu1 %v186_v23 }
  0xcd   : > { %v224_v24 = vpop.f32.mrf.mxu0  ;;  %v230_v25 = vpop.f32.mrf.mxu1 }
  0xce   : > { %248 = vst [vmem:[%s180_s15] sm:$0xff] %v224_v24 }
  0xcf   : > { %250 = vst [vmem:[%s180_s15 + $0x10] sm:$0xff] %v230_v25 }
  0xd1   : > { %v236_v26 = vpop.f32.mrf.mxu2  ;;  %v242_v27 = vpop.f32.mrf.mxu3 }
  0xd2   : > { %252 = vst [vmem:[%s180_s15 + $0x20] sm:$0xff] %v236_v26 }
  0xd3   : > { %254 = vst [vmem:[%s180_s15 + $0x30] sm:$0xff] %v242_v27 }
  0xd5   : > { %v227_v28 = vpop.f32.mrf.mxu0  ;;  %v233_v29 = vpop.f32.mrf.mxu1 }
  0xd6   : > { %249 = vst [vmem:[%s180_s15 + $0x8] sm:$0xff] %v227_v28 }
  0xd7   : > { %251 = vst [vmem:[%s180_s15 + $0x18] sm:$0xff] %v233_v29 }
  0xd9   : > { %v239_v30 = vpop.f32.mrf.mxu2  ;;  %v245_v31 = vpop.f32.mrf.mxu3 }
  0xda   : > { %253 = vst [vmem:[%s180_s15 + $0x28] sm:$0xff] %v239_v30 }
  0xdb   : > { %255 = vst [vmem:[%s180_s15 + $0x38] sm:$0xff] %v245_v31 }
  0xdc   : > { %569 = shalt.err (!%p566_p10)
}
  0xdd   : > { %s617_s5 = smov 128   ;;  %s618_s30 = smov 8  }
  0xde   : > { %427 = dma.vmem_to_hbm [thread:$0]  (%p702_p0), %s270_s17, 1024, %s272_s18, %s257_s13, %s617_s5, %s617_s5, %s618_s30  }
  0xdf PF: > { %p444_p11 = scmp.ge.s32.totalorder %s612_s12, 2  ;;  %s286_s6 = sand.u32 1, %s600_s9  }
  0xe0   : > { %s287_s7 = scalar_lea.sflag [#allocation4], %s286_s6 }
  0xe1   : > { %p438_p12 = pnand %p444_p11, %p669_p6 }
  0xe3   : > { %p439_p13 = pneg %p438_p12 }
  0xe5   : > { %595 = dma.done.wait (%p439_p13), %s287_s7, 1024  }
  0xe6   : > { %597 = vsyncadd (%p439_p13), %s287_s7, 4294966272  ;;  %p16_p3 = scmp.ge.s32.totalorder %s686_s23, 6   ;;  %s798_s9 = smov %s604_s10 }
  0xe7   : > { %s799_s10 = smov %s608_s11  ;;  %s800_s11 = smov %s698_s28 }
  0xe8   : > { %s801_s12 = smov %s686_s23  ;;  %18 = sbr.rel (!%p16_p3) target bundleno = 6 (0x6), region = 77 }
  0xed   :  { %293 = vsyncpa [#allocation3], 1 }
  0xee   :  { %295 = vsyncpa [#allocation3 + $0x1], 1 }
  0xef   :  { %296 = vsyncpa [#allocation6], 1 }
  0xf0   :  { %297 = vsyncpa [#allocation4], 1 }
  0xf1   :  { %299 = vsyncpa [#allocation4 + $0x1], 1 }

</bundles_post_ra>
